<compile_context>
chip_gen: v7x
topology: tpu7x:2x2x1
jax: 0.10.0
libtpu: 0.0.40
codegen_flags: <defaults>
</compile_context>

<pallas_src>
import numpy as np
import jax
import jax.numpy as jnp
from jax.experimental import pallas as pl
from jax.experimental.pallas import tpu as pltpu


# ----------------------------- Pallas kernel -----------------------------
def basic_block_kernel(x_ref, w1_ref, w2_ref, s1_ref, t1_ref, s2_ref, t2_ref,
                       o_ref):
    H = x_ref.shape[1]
    WCo = o_ref.shape[2]                         # W * Cout (lane-dense = 128)

    # --- BN1 (eval, folded scale/shift tiled to W*Cin lanes) + ReLU ---
    a = jnp.maximum(x_ref[0] * s1_ref[...] + t1_ref[...], 0.0)   # (H, W*Cin)

    # --- conv1 (3x3, pad 1) + folded 1x1 shortcut: ONE matmul ---
    # w1_ref columns: [ dh=-1 | dh=0 | dh=+1 | shortcut ], each W*Cout wide.
    # (Operands kept f32 for tight tolerance; on v6e/v7x they could be cast to
    #  bf16 with preferred_element_type=f32 for extra MXU throughput.)
    b = jnp.dot(a, w1_ref[...], preferred_element_type=jnp.float32)  # (H, 4*WCo)

    row = jax.lax.broadcasted_iota(jnp.int32, (H, WCo), 0)
    # dh = -1 tap: output row i takes band-result row i-1 (zero at i = 0)
    p_m1 = jnp.where(row > 0,
                     pltpu.roll(b[:, 0 * WCo:1 * WCo], shift=1, axis=0), 0.0)
    p_0 = b[:, 1 * WCo:2 * WCo]
    # dh = +1 tap: output row i takes band-result row i+1 (zero at i = H-1)
    p_p1 = jnp.where(row < H - 1,
                     pltpu.roll(b[:, 2 * WCo:3 * WCo], shift=H - 1, axis=0), 0.0)
    sc = b[:, 3 * WCo:4 * WCo]                   # 1x1 shortcut on relu(bn1(x))
    conv1 = p_m1 + p_0 + p_p1

    # --- BN2 + ReLU ---
    h = jnp.maximum(conv1 * s2_ref[...] + t2_ref[...], 0.0)         # (H, WCo)
    # TODO(synk): F.dropout(training=True) not reproduced (torch RNG stream is
    # not reproducible in Pallas); eval-mode identity is used here.

    # --- conv2 (3x3, pad 1): ONE matmul ---
    c = jnp.dot(h, w2_ref[...], preferred_element_type=jnp.float32)  # (H, 3*WCo)
    q_m1 = jnp.where(row > 0,
                     pltpu.roll(c[:, 0 * WCo:1 * WCo], shift=1, axis=0), 0.0)
    q_0 = c[:, 1 * WCo:2 * WCo]
    q_p1 = jnp.where(row < H - 1,
                     pltpu.roll(c[:, 2 * WCo:3 * WCo], shift=H - 1, axis=0), 0.0)
    conv2 = q_m1 + q_0 + q_p1

    # --- residual add; lane-dense (H, W*Cout) unmasked store ---
    o_ref[0] = (sc + conv2).astype(o_ref.dtype)


# ------------------------------- wrapper ----------------------------------
def basic_block_nhwc(x_nhwc, w1_big, w2_big, s1, t1, s2, t2):
    """x_nhwc: [N, H, W, Cin] (NHWC end-to-end).  Returns [N, H, W, Cout]."""
    N, H, W, Ci = x_nhwc.shape
    WCi = W * Ci
    WCo = w2_big.shape[0]                        # W * Cout
    Co = WCo // W

    x2 = x_nhwc.reshape(N, H, WCi)               # contiguous flatten (free)

    out = pl.pallas_call(
        basic_block_kernel,
        out_shape=jax.ShapeDtypeStruct((N, H, WCo), x_nhwc.dtype),
        grid_spec=pltpu.PrefetchScalarGridSpec(
            num_scalar_prefetch=0,
            grid=(N,),                           # size-2 parallel axis (v7x: 1 img / TC)
            in_specs=[
                pl.BlockSpec((1, H, WCi), lambda n: (n, 0, 0)),     # x (image n)
                pl.BlockSpec((WCi, 4 * WCo), lambda n: (0, 0)),     # packed W1 + shortcut
                pl.BlockSpec((WCo, 3 * WCo), lambda n: (0, 0)),     # packed W2
                pl.BlockSpec((1, WCi), lambda n: (0, 0)),           # bn1 scale (tiled)
                pl.BlockSpec((1, WCi), lambda n: (0, 0)),           # bn1 shift (tiled)
                pl.BlockSpec((1, WCo), lambda n: (0, 0)),           # bn2 scale (tiled)
                pl.BlockSpec((1, WCo), lambda n: (0, 0)),           # bn2 shift (tiled)
            ],
            out_specs=pl.BlockSpec((1, H, WCo), lambda n: (n, 0, 0)),
        ),
        compiler_params=pltpu.CompilerParams(dimension_semantics=("parallel",)),
    )(x2, w1_big, w2_big, s1, t1, s2, t2)

    return out.reshape(N, H, W, Co)


# ------------------- host-side one-time weight packing --------------------
def _band_matrix(w_hwio, dh, W):
    """(3,3,Ci,Co) conv weights -> (W*Ci, W*Co) width-banded matrix, row offset dh."""
    _, _, Ci, Co = w_hwio.shape
    m = np.zeros((W, Ci, W, Co), np.float32)
    for wo in range(W):
        for dw in (-1, 0, 1):
            wi = wo + dw
            if 0 <= wi < W:
                m[wi, :, wo, :] = w_hwio[dh + 1, dw + 1]
    return m.reshape(W * Ci, W * Co)


def _block_diag_1x1(ws_io, W):
    """(Ci, Co) 1x1 conv weights -> (W*Ci, W*Co) block-diagonal matrix."""
    Ci, Co = ws_io.shape
    m = np.zeros((W, Ci, W, Co), np.float32)
    for wo in range(W):
        m[wo, :, wo, :] = ws_io
    return m.reshape(W * Ci, W * Co)


def pack_basic_block_params(w1, w2, ws, g1, b1, m1, v1, g2, b2, m2, v2, W,
                            eps=1e-5):
    """Pack torch-layout (OIHW) params into kernel-ready matrices/vectors (once)."""
    w1_hwio = np.transpose(np.asarray(w1), (2, 3, 1, 0))      # (3,3,Cin,Cout)
    w2_hwio = np.transpose(np.asarray(w2), (2, 3, 1, 0))      # (3,3,Cout,Cout)
    ws_io = np.asarray(ws)[:, :, 0, 0].T                      # (Cin, Cout)

    w1_big = np.concatenate(
        [_band_matrix(w1_hwio, -1, W), _band_matrix(w1_hwio, 0, W),
         _band_matrix(w1_hwio, +1, W), _block_diag_1x1(ws_io, W)], axis=1)
    w2_big = np.concatenate(
        [_band_matrix(w2_hwio, -1, W), _band_matrix(w2_hwio, 0, W),
         _band_matrix(w2_hwio, +1, W)], axis=1)

    def fold(g, b, m, v):
        s = np.asarray(g) / np.sqrt(np.asarray(v) + eps)
        t = np.asarray(b) - np.asarray(m) * s
        return s, t

    s1, t1 = fold(g1, b1, m1, v1)
    s2, t2 = fold(g2, b2, m2, v2)
    # Tile per-channel vectors across W so they broadcast in (H, W*C) layout.
    tile = lambda v: np.tile(v, W).reshape(1, -1)
    asj = lambda a: jnp.asarray(a, jnp.float32)
    return dict(w1_big=asj(w1_big), w2_big=asj(w2_big),
                s1=asj(tile(s1)), t1=asj(tile(t1)),
                s2=asj(tile(s2)), t2=asj(tile(t2)))


# ---------------- pure-JAX reference (NCHW, mirrors torch) -----------------
def reference(x, p, eps=1e-5):
    def bn(z, g, b, m, v):
        return (z - m[None, :, None, None]) / jnp.sqrt(v + eps)[None, :, None, None] \
               * g[None, :, None, None] + b[None, :, None, None]

    a = jax.nn.relu(bn(x, p['g1'], p['b1'], p['m1'], p['v1']))
    h = jax.lax.conv_general_dilated(a, p['w1'], (1, 1), ((1, 1), (1, 1)),
                                     dimension_numbers=('NCHW', 'OIHW', 'NCHW'))
    h = jax.nn.relu(bn(h, p['g2'], p['b2'], p['m2'], p['v2']))
    h = jax.lax.conv_general_dilated(h, p['w2'], (1, 1), ((1, 1), (1, 1)),
                                     dimension_numbers=('NCHW', 'OIHW', 'NCHW'))
    sc = jax.lax.conv_general_dilated(a, p['ws'], (1, 1), ((0, 0), (0, 0)),
                                      dimension_numbers=('NCHW', 'OIHW', 'NCHW'))
    return sc + h


if __name__ == "__main__":
    N, Cin, Cout, H, W = 2, 4, 8, 16, 16
    eps = 1e-5
    keys = jax.random.split(jax.random.PRNGKey(0), 16)

    x = jax.random.normal(keys[0], (N, Cin, H, W), jnp.float32)   # torch-style NCHW

    # deterministic synthetic parameters (torch conv layout: OIHW, no bias)
    w1 = jax.random.normal(keys[1], (Cout, Cin, 3, 3), jnp.float32) * 0.1
    w2 = jax.random.normal(keys[2], (Cout, Cout, 3, 3), jnp.float32) * 0.1
    ws = jax.random.normal(keys[3], (Cout, Cin, 1, 1), jnp.float32) * 0.1
    g1 = jax.random.uniform(keys[4], (Cin,), jnp.float32, 0.5, 1.5)
    b1 = jax.random.normal(keys[5], (Cin,), jnp.float32) * 0.1
    m1 = jax.random.normal(keys[6], (Cin,), jnp.float32) * 0.1
    v1 = jax.random.uniform(keys[7], (Cin,), jnp.float32, 0.5, 1.5)
    g2 = jax.random.uniform(keys[8], (Cout,), jnp.float32, 0.5, 1.5)
    b2 = jax.random.normal(keys[9], (Cout,), jnp.float32) * 0.1
    m2 = jax.random.normal(keys[10], (Cout,), jnp.float32) * 0.1
    v2 = jax.random.uniform(keys[11], (Cout,), jnp.float32, 0.5, 1.5)

    params = pack_basic_block_params(w1, w2, ws, g1, b1, m1, v1,
                                     g2, b2, m2, v2, W, eps)

    # Test-harness only: the kernel API is NHWC end-to-end (per perf feedback);
    # a real NHWC pipeline feeds NHWC activations directly, so these transposes
    # exist only to compare against the NCHW torch-style reference.
    x_nhwc = jnp.transpose(x, (0, 2, 3, 1))
    out_nhwc = basic_block_nhwc(x_nhwc, params['w1_big'], params['w2_big'],
                                params['s1'], params['t1'],
                                params['s2'], params['t2'])
    out_nhwc = jax.block_until_ready(out_nhwc)
    out = jnp.transpose(out_nhwc, (0, 3, 1, 2))                   # -> NCHW

    ref = reference(x, dict(w1=w1, w2=w2, ws=ws, g1=g1, b1=b1, m1=m1, v1=v1,
                            g2=g2, b2=b2, m2=m2, v2=v2))
    assert out.shape == (N, Cout, H, W)
    assert jnp.allclose(out, ref, atol=1e-2, rtol=1e-2), \
        f"max abs err {jnp.max(jnp.abs(out - ref))}"

    print("KERNEL_OK")
</pallas_src>

<mosaic_0001>
module attributes {stable_mosaic.version = 11 : i64} {
  func.func @basic_block_kernel(%arg0: i32, %arg1: memref<1x16x64xf32, #tpu.memory_space<vmem>>, %arg2: memref<64x512xf32, #tpu.memory_space<vmem>>, %arg3: memref<128x384xf32, #tpu.memory_space<vmem>>, %arg4: memref<1x64xf32, #tpu.memory_space<vmem>>, %arg5: memref<1x64xf32, #tpu.memory_space<vmem>>, %arg6: memref<1x128xf32, #tpu.memory_space<vmem>>, %arg7: memref<1x128xf32, #tpu.memory_space<vmem>>, %arg8: memref<1x16x128xf32, #tpu.memory_space<vmem>>) attributes {dimension_semantics = [#tpu.dimension_semantics<parallel>], iteration_bounds = array<i64: 2>, scalar_prefetch = 0 : i64, scratch_operands = 0 : i64, tpu.core_type = #tpu.core_type<tc>, window_params = [{transform_indices = @transform_0, window_bounds = array<i64: 1, 16, 64>}, {pipeline_mode = #tpu.pipeline_mode<synchronous>, transform_indices = @transform_1, window_bounds = array<i64: 64, 512>}, {pipeline_mode = #tpu.pipeline_mode<synchronous>, transform_indices = @transform_2, window_bounds = array<i64: 128, 384>}, {pipeline_mode = #tpu.pipeline_mode<synchronous>, transform_indices = @transform_3, window_bounds = array<i64: 1, 64>}, {pipeline_mode = #tpu.pipeline_mode<synchronous>, transform_indices = @transform_4, window_bounds = array<i64: 1, 64>}, {pipeline_mode = #tpu.pipeline_mode<synchronous>, transform_indices = @transform_5, window_bounds = array<i64: 1, 128>}, {pipeline_mode = #tpu.pipeline_mode<synchronous>, transform_indices = @transform_6, window_bounds = array<i64: 1, 128>}, {transform_indices = @transform_7, window_bounds = array<i64: 1, 16, 128>}]} {
    %c0 = arith.constant 0 : index
    %c0_0 = arith.constant 0 : index
    %c0_1 = arith.constant 0 : index
    %0 = vector.load %arg1[%c0, %c0_0, %c0_1] : memref<1x16x64xf32, #tpu.memory_space<vmem>>, vector<1x16x64xf32>
    %1 = vector.shape_cast %0 : vector<1x16x64xf32> to vector<16x64xf32>
    %c0_2 = arith.constant 0 : index
    %c0_3 = arith.constant 0 : index
    %2 = vector.load %arg4[%c0_2, %c0_3] : memref<1x64xf32, #tpu.memory_space<vmem>>, vector<1x64xf32>
    %3 = vector.broadcast %2 : vector<1x64xf32> to vector<16x64xf32>
    %4 = arith.mulf %1, %3 : vector<16x64xf32>
    %c0_4 = arith.constant 0 : index
    %c0_5 = arith.constant 0 : index
    %5 = vector.load %arg5[%c0_4, %c0_5] : memref<1x64xf32, #tpu.memory_space<vmem>>, vector<1x64xf32>
    %6 = vector.broadcast %5 : vector<1x64xf32> to vector<16x64xf32>
    %7 = arith.addf %4, %6 : vector<16x64xf32>
    %cst = arith.constant 0.000000e+00 : f32
    %8 = vector.broadcast %cst : f32 to vector<16x64xf32>
    %9 = arith.maximumf %7, %8 : vector<16x64xf32>
    %c0_6 = arith.constant 0 : index
    %c0_7 = arith.constant 0 : index
    %10 = vector.load %arg2[%c0_6, %c0_7] : memref<64x512xf32, #tpu.memory_space<vmem>>, vector<64x512xf32>
    %cst_8 = arith.constant dense<0.000000e+00> : vector<16x512xf32>
    %11 = tpu.matmul %9, %10, %cst_8 {dimension_numbers = #tpu.dot_dimension_numbers<[1], [0], [0], [1], [0, 0, 1, 1], [], []>} : vector<16x64xf32>, vector<64x512xf32>, vector<16x512xf32> -> vector<16x512xf32>
    %12 = tpu.iota {dimensions = array<i32: 0>} : vector<16x128xi32>
    %c0_i32 = arith.constant 0 : i32
    %13 = vector.broadcast %c0_i32 : i32 to vector<16x128xi32>
    %14 = arith.cmpi sgt, %12, %13 : vector<16x128xi32>
    %15 = vector.extract_strided_slice %11 {offsets = [0, 0], sizes = [16, 128], strides = [1, 1]} : vector<16x512xf32> to vector<16x128xf32>
    %c1_i32 = arith.constant 1 : i32
    %16 = tpu.dynamic_rotate %15 by %c1_i32 dim 0 : vector<16x128xf32>, i32 -> vector<16x128xf32>
    %cst_9 = arith.constant 0.000000e+00 : f32
    %17 = vector.broadcast %cst_9 : f32 to vector<16x128xf32>
    %18 = arith.select %14, %16, %17 : vector<16x128xi1>, vector<16x128xf32>
    %19 = vector.extract_strided_slice %11 {offsets = [0, 128], sizes = [16, 128], strides = [1, 1]} : vector<16x512xf32> to vector<16x128xf32>
    %c15_i32 = arith.constant 15 : i32
    %20 = vector.broadcast %c15_i32 : i32 to vector<16x128xi32>
    %21 = arith.cmpi slt, %12, %20 : vector<16x128xi32>
    %22 = vector.extract_strided_slice %11 {offsets = [0, 256], sizes = [16, 128], strides = [1, 1]} : vector<16x512xf32> to vector<16x128xf32>
    %c15_i32_10 = arith.constant 15 : i32
    %23 = tpu.dynamic_rotate %22 by %c15_i32_10 dim 0 : vector<16x128xf32>, i32 -> vector<16x128xf32>
    %cst_11 = arith.constant 0.000000e+00 : f32
    %24 = vector.broadcast %cst_11 : f32 to vector<16x128xf32>
    %25 = arith.select %21, %23, %24 : vector<16x128xi1>, vector<16x128xf32>
    %26 = vector.extract_strided_slice %11 {offsets = [0, 384], sizes = [16, 128], strides = [1, 1]} : vector<16x512xf32> to vector<16x128xf32>
    %27 = arith.addf %18, %19 : vector<16x128xf32>
    %28 = arith.addf %27, %25 : vector<16x128xf32>
    %c0_12 = arith.constant 0 : index
    %c0_13 = arith.constant 0 : index
    %29 = vector.load %arg6[%c0_12, %c0_13] : memref<1x128xf32, #tpu.memory_space<vmem>>, vector<1x128xf32>
    %30 = vector.broadcast %29 : vector<1x128xf32> to vector<16x128xf32>
    %31 = arith.mulf %28, %30 : vector<16x128xf32>
    %c0_14 = arith.constant 0 : index
    %c0_15 = arith.constant 0 : index
    %32 = vector.load %arg7[%c0_14, %c0_15] : memref<1x128xf32, #tpu.memory_space<vmem>>, vector<1x128xf32>
    %33 = vector.broadcast %32 : vector<1x128xf32> to vector<16x128xf32>
    %34 = arith.addf %31, %33 : vector<16x128xf32>
    %cst_16 = arith.constant 0.000000e+00 : f32
    %35 = vector.broadcast %cst_16 : f32 to vector<16x128xf32>
    %36 = arith.maximumf %34, %35 : vector<16x128xf32>
    %c0_17 = arith.constant 0 : index
    %c0_18 = arith.constant 0 : index
    %37 = vector.load %arg3[%c0_17, %c0_18] : memref<128x384xf32, #tpu.memory_space<vmem>>, vector<128x384xf32>
    %cst_19 = arith.constant dense<0.000000e+00> : vector<16x384xf32>
    %38 = tpu.matmul %36, %37, %cst_19 {dimension_numbers = #tpu.dot_dimension_numbers<[1], [0], [0], [1], [0, 0, 1, 1], [], []>} : vector<16x128xf32>, vector<128x384xf32>, vector<16x384xf32> -> vector<16x384xf32>
    %c0_i32_20 = arith.constant 0 : i32
    %39 = vector.broadcast %c0_i32_20 : i32 to vector<16x128xi32>
    %40 = arith.cmpi sgt, %12, %39 : vector<16x128xi32>
    %41 = vector.extract_strided_slice %38 {offsets = [0, 0], sizes = [16, 128], strides = [1, 1]} : vector<16x384xf32> to vector<16x128xf32>
    %c1_i32_21 = arith.constant 1 : i32
    %42 = tpu.dynamic_rotate %41 by %c1_i32_21 dim 0 : vector<16x128xf32>, i32 -> vector<16x128xf32>
    %cst_22 = arith.constant 0.000000e+00 : f32
    %43 = vector.broadcast %cst_22 : f32 to vector<16x128xf32>
    %44 = arith.select %40, %42, %43 : vector<16x128xi1>, vector<16x128xf32>
    %45 = vector.extract_strided_slice %38 {offsets = [0, 128], sizes = [16, 128], strides = [1, 1]} : vector<16x384xf32> to vector<16x128xf32>
    %c15_i32_23 = arith.constant 15 : i32
    %46 = vector.broadcast %c15_i32_23 : i32 to vector<16x128xi32>
    %47 = arith.cmpi slt, %12, %46 : vector<16x128xi32>
    %48 = vector.extract_strided_slice %38 {offsets = [0, 256], sizes = [16, 128], strides = [1, 1]} : vector<16x384xf32> to vector<16x128xf32>
    %c15_i32_24 = arith.constant 15 : i32
    %49 = tpu.dynamic_rotate %48 by %c15_i32_24 dim 0 : vector<16x128xf32>, i32 -> vector<16x128xf32>
    %cst_25 = arith.constant 0.000000e+00 : f32
    %50 = vector.broadcast %cst_25 : f32 to vector<16x128xf32>
    %51 = arith.select %47, %49, %50 : vector<16x128xi1>, vector<16x128xf32>
    %52 = arith.addf %44, %45 : vector<16x128xf32>
    %53 = arith.addf %52, %51 : vector<16x128xf32>
    %54 = arith.addf %26, %53 : vector<16x128xf32>
    %c0_26 = arith.constant 0 : index
    %c0_27 = arith.constant 0 : index
    %c0_28 = arith.constant 0 : index
    %55 = vector.load %arg8[%c0_26, %c0_27, %c0_28] : memref<1x16x128xf32, #tpu.memory_space<vmem>>, vector<1x16x128xf32>
    %56 = vector.shape_cast %55 : vector<1x16x128xf32> to vector<16x128xf32>
    %57 = vector.shape_cast %54 : vector<16x128xf32> to vector<1x16x128xf32>
    tpu.vector_store %arg8[%c0_26, %c0_27, %c0_28], %57 {strides = array<i32>} : memref<1x16x128xf32, #tpu.memory_space<vmem>>, vector<1x16x128xf32>,
    return
  }
  func.func @transform_0(%arg0: i32) -> (i32, i32, i32) {
    %c0_i32 = arith.constant 0 : i32
    %c0_i32_0 = arith.constant 0 : i32
    %c0_i32_1 = arith.constant 0 : i32
    return %arg0, %c0_i32, %c0_i32_0 : i32, i32, i32
  }
  func.func @transform_1(%arg0: i32) -> (i32, i32) {
    %c0_i32 = arith.constant 0 : i32
    %c0_i32_0 = arith.constant 0 : i32
    %c0_i32_1 = arith.constant 0 : i32
    return %c0_i32, %c0_i32_0 : i32, i32
  }
  func.func @transform_2(%arg0: i32) -> (i32, i32) {
    %c0_i32 = arith.constant 0 : i32
    %c0_i32_0 = arith.constant 0 : i32
    %c0_i32_1 = arith.constant 0 : i32
    return %c0_i32, %c0_i32_0 : i32, i32
  }
  func.func @transform_3(%arg0: i32) -> (i32, i32) {
    %c0_i32 = arith.constant 0 : i32
    %c0_i32_0 = arith.constant 0 : i32
    %c0_i32_1 = arith.constant 0 : i32
    return %c0_i32, %c0_i32_0 : i32, i32
  }
  func.func @transform_4(%arg0: i32) -> (i32, i32) {
    %c0_i32 = arith.constant 0 : i32
    %c0_i32_0 = arith.constant 0 : i32
    %c0_i32_1 = arith.constant 0 : i32
    return %c0_i32, %c0_i32_0 : i32, i32
  }
  func.func @transform_5(%arg0: i32) -> (i32, i32) {
    %c0_i32 = arith.constant 0 : i32
    %c0_i32_0 = arith.constant 0 : i32
    %c0_i32_1 = arith.constant 0 : i32
    return %c0_i32, %c0_i32_0 : i32, i32
  }
  func.func @transform_6(%arg0: i32) -> (i32, i32) {
    %c0_i32 = arith.constant 0 : i32
    %c0_i32_0 = arith.constant 0 : i32
    %c0_i32_1 = arith.constant 0 : i32
    return %c0_i32, %c0_i32_0 : i32, i32
  }
  func.func @transform_7(%arg0: i32) -> (i32, i32, i32) {
    %c0_i32 = arith.constant 0 : i32
    %c0_i32_0 = arith.constant 0 : i32
    %c0_i32_1 = arith.constant 0 : i32
    return %arg0, %c0_i32, %c0_i32_0 : i32, i32, i32
  }
}

</mosaic_0001>

<bundles_post_ra>
// kernel: tpu_custom_call.1
= control target key start
LH: loop header
LB: loop body
LE: loop exit
PB: predicated region body
PF: predicated region fallthrough
CT: control target
= control target key end

     0   :  { %12 = vsyncpa [#allocation3], 0  ;;  %s1655_s0 = inlined_call_operand.hbm [shape: f32[2,16,64], index: 0, kind: input, shape index: {}]   ;;  %s1656_s1 = inlined_call_operand.hbm [shape: f32[64,512], index: 1, kind: input, shape index: {}]   ;;  %s1657_s2 = inlined_call_operand.hbm [shape: f32[128,384], index: 2, kind: input, shape index: {}]   ;;  %s1658_s3 = inlined_call_operand.vmem [shape: f32[1,64], index: 3, kind: input, shape index: {}]   ;;  %s1659_s4 = inlined_call_operand.vmem [shape: f32[1,64], index: 4, kind: input, shape index: {}]   ;;  %s1660_s5 = inlined_call_operand.vmem [shape: f32[1,128], index: 5, kind: input, shape index: {}]   ;;  %s1661_s6 = inlined_call_operand.vmem [shape: f32[1,128], index: 6, kind: input, shape index: {}]   ;;  %s1662_s7 = inlined_call_operand.hbm [shape: f32[2,16,128], index: 7, kind: output, shape index: {}]  }
   0x1   :  { %14 = vsyncpa [#allocation3 + $0x1], 0 }
   0x2   :  { %15 = vsyncpa [#allocation6], 0 }
   0x3   :  { %16 = vsyncpa [#allocation4], 0 }
   0x4   :  { %18 = vsyncpa [#allocation4 + $0x1], 0  ;;  %s1376_s24 = smov 0   ;;  %s1378_s25 = smov 0  }
   0x5   :  { %s1380_s26 = smov 0   ;;  %s1382_s27 = smov 0  }
   0x6 LB: > { %s1397_s28 = sadd.s32 4294967295, %s1321_s27   ;;  %s912_s29 = sadd.s32 4294967294, %s1321_s27   ;;  %s1321_s27 = sphi %s1382_s27, %s1682_s27   ;;  %s1317_s26 = sphi %s1380_s26, %s1681_s26   ;;  %s1313_s25 = sphi %s1378_s25, %s1680_s25   ;;  %s1309_s24 = sphi %s1376_s24, %s1679_s24  }
   0x7   : > { %p44_p0 = scmp.ne.s32.totalorder %s1313_s25, %s1309_s24  ;;  %p1663_p1 = scmp.eq.s32.totalorder %s1397_s28, 0 }
   0x8   : > { %p200_p3 = scmp.eq.s32.totalorder %s912_s29, 1  ;;  %p913_p5 = scmp.ge.s32.totalorder %s1321_s27, 1 }
   0x9   : > { %p1406_p4 = por %p1663_p1, %p44_p0  ;;  %p207_p7 = scmp.lt.s32.totalorder %s1321_s27, 3 }
   0xa   : > { %p1411_p6 = por %p200_p3, %p44_p0  ;;  %s1323_s10 = smov [#allocation5]  }
   0xb   : > { %s1666_s30 = scalar_select %p1406_p4, 1, 0 }
   0xc   : > { %s1667_s8 = scalar_select %p1411_p6, 1, 0 }
   0xd   : > { %p1416_p8 = pnand %p913_p5, %p207_p7  ;;  %s219_s11 = sshll.u32 %s1323_s10, 4  ;;  %s1420_s11 = int_to_ptr.vmem [resolvable:$true] %s219_s11 }
   0xe   : > { %s1324_s13 = smov [#allocation7]   ;;  %s1165_s17 = scalar_lea.hbm %s1656_s1, 4096 }
   0xf   : > { %p1101_p9 = pneg %p1416_p8  ;;  %s232_s14 = sshll.u32 %s1324_s13, 4  ;;  %s1431_s14 = int_to_ptr.vmem [resolvable:$true] %s232_s14 }
  0x10   : > { %p1166_p12 = scmp.ne.s32.totalorder %s1656_s1, %s1165_s17  ;;  %p1172_p5 = scmp.lt.u32.totalorder %s1165_s17, %s1656_s1 }
  0x11   : > { %p1427_p11 = pnand %p1101_p9, %p1663_p1 }
  0x13   : > { %p1167_p13 = pneg %p1427_p11 }
  0x15   : > { %p1168_p0 = pnand %p1167_p13, %p1166_p12 }
  0x17   : > { %p1169_p3 = pneg %p1168_p0 }
  0x19   : > { %p1174_p7 = pnand %p1172_p5, %p1169_p3 }
  0x1b   : > { %1177 = shalt.err (!%p1174_p7)
}
  0x1c   : > { %s1178_s22 = scalar_lea.vmem %s1420_s11, 4096  ;;  %p1186_p2 = scmp.lt.s32.totalorder %s1420_s11, %s1420_s11 }
  0x1d   : > { %p1179_p9 = scmp.ne.s32.totalorder %s1420_s11, %s1178_s22  ;;  %p1187_p12 = scmp.lt.s32.totalorder %s1178_s22, %s1178_s22 }
  0x1f   : > { %p1181_p10 = pnand %p1179_p9, %p1167_p13  ;;  %p1188_p0 = por %p1187_p12, %p1186_p2 }
  0x21   : > { %p1182_p1 = pneg %p1181_p10 }
  0x23   : > { %p1189_p6 = pnand %p1188_p0, %p1182_p1 }
  0x25   : > { %1192 = shalt.err (!%p1189_p6)
}
  0x26   : > { %s1325_s23 = smov 512   ;;  %s1326_s29 = smov 32  }
  0x27   : > { %1104 = dma.hbm_to_vmem [thread:$0]  (!%p1427_p11), %s1656_s1, 4096, %s1420_s11, [#allocation6], %s1325_s23, %s1325_s23, %s1326_s29  }
  0x28   : > { %s1193_s17 = scalar_lea.hbm %s1657_s2, 6144 }
  0x29   : > { %p1194_p2 = scmp.ne.s32.totalorder %s1657_s2, %s1193_s17  ;;  %p1200_p10 = scmp.lt.u32.totalorder %s1193_s17, %s1657_s2 }
  0x2b   : > { %p1196_p1 = pnand %p1194_p2, %p1167_p13 }
  0x2d   : > { %p1197_p6 = pneg %p1196_p1 }
  0x2f   : > { %p1202_p3 = pnand %p1200_p10, %p1197_p6 }
  0x31   : > { %1205 = shalt.err (!%p1202_p3)
}
  0x32   : > { %s1206_s11 = scalar_lea.vmem %s1431_s14, 6144  ;;  %p1214_p12 = scmp.lt.s32.totalorder %s1431_s14, %s1431_s14 }
  0x33   : > { %p1207_p5 = scmp.ne.s32.totalorder %s1431_s14, %s1206_s11  ;;  %p1215_p0 = scmp.lt.s32.totalorder %s1206_s11, %s1206_s11 }
  0x35   : > { %p1209_p7 = pnand %p1207_p5, %p1167_p13  ;;  %p1216_p2 = por %p1215_p0, %p1214_p12 }
  0x37   : > { %p1210_p9 = pneg %p1209_p7 }
  0x39   : > { %p1217_p1 = pnand %p1216_p2, %p1210_p9 }
  0x3b   : > { %1220 = shalt.err (!%p1217_p1)
}
  0x3c   : > { %s1327_s22 = smov 384   ;;  %s1328_s23 = smov 24  }
  0x3d   : > { %1107 = dma.hbm_to_vmem [thread:$0]  (!%p1427_p11), %s1657_s2, 6144, %s1431_s14, [#allocation6], %s1327_s22, %s1327_s22, %s1328_s23  }
  0x3e   : > { %s1486_s13 = sadd.s32 1, %s1321_s27   ;;  %s31_s16 = sadd.s32 1, %s1317_s26 }
  0x3f   : > { %s28_s15 = ssub.s32 %s1321_s27, %s1486_s13  ;;  %p38_p6 = scmp.ne.s32.totalorder %s1317_s26, %s1313_s25 }
  0x40   : > { %p29_p13 = scmp.eq.s32.totalorder %s28_s15, 0  ;;  %p39_p10 = scmp.eq.s32.totalorder %s1321_s27, 0 }
  0x41   : > { %p1670_p5 = scmp.eq.s32.totalorder %s1397_s28, 1  ;;  %p1118_p9 = scmp.lt.s32.totalorder %s1321_s27, 2 }
  0x42   : > { %s1495_s17 = scalar_select %p29_p13, %s1317_s26, %s31_s16  }
  0x43   : > { %p40_p3 = por %p39_p10, %p38_p6  ;;  %p1499_p7 = por %p1670_p5, %p38_p6 }
  0x44   : > { %s258_s12 = sand.u32 1, %s1317_s26   ;;  %s938_s14 = sshll.u32 %s1321_s27, 8 }
  0x45   : > { %s1671_s18 = scalar_select %p1499_p7, 1, 0 }
  0x46   : > { %s917_s19 = sshll.u32 %s258_s12, 4  ;;  %s1509_s11 = scalar_lea.hbm %s1655_s0, %s938_s14 }
  0x47   : > { %s262_s22 = scalar_lea.vmem [#allocation2], %s917_s19  ;;  %p1513_p11 = pnand %p1118_p9, %p40_p3 }
  0x48   : > { %s269_s23 = sshll.u32 %s262_s22, 4  ;;  %s1517_s10 = scalar_lea.sflag [#allocation3], %s258_s12  ;;  %s1511_s23 = int_to_ptr.vmem [resolvable:$true] %s269_s23 }
  0x49   : > { %s1221_s15 = scalar_lea.hbm %s1509_s11, 256  ;;  %p1223_p0 = pneg %p1513_p11 }
  0x4a   : > { %p1222_p12 = scmp.ne.s32.totalorder %s1509_s11, %s1221_s15  ;;  %s1226_s14 = scalar_lea.hbm %s1655_s0, 512 }
  0x4b   : > { %p1227_p13 = scmp.lt.u32.totalorder %s1509_s11, %s1655_s0  ;;  %p1228_p6 = scmp.lt.u32.totalorder %s1226_s14, %s1221_s15 }
  0x4c   : > { %p1224_p2 = pnand %p1223_p0, %p1222_p12  ;;  %p1230_p3 = scmp.lt.u32.totalorder %s1221_s15, %s1509_s11 }
  0x4d   : > { %p1229_p10 = por %p1228_p6, %p1227_p13 }
  0x4e   : > { %p1225_p1 = pneg %p1224_p2 }
  0x4f   : > { %p1231_p5 = por %p1230_p3, %p1229_p10 }
  0x51   : > { %p1232_p9 = pnand %p1231_p5, %p1225_p1 }
  0x53   : > { %1235 = shalt.err (!%p1232_p9)
}
  0x54   : > { %s1236_s12 = scalar_lea.vmem %s1511_s23, 256  ;;  %s1329_s22 = smov [#allocation2]  }
  0x55   : > { %p1237_p12 = scmp.ne.s32.totalorder %s1511_s23, %s1236_s12  ;;  %s1241_s16 = sshll.u32 %s1329_s22, 4  ;;  %s1242_s16 = int_to_ptr.vmem [resolvable:$false] %s1241_s16 }
  0x56   : > { %s1243_s19 = scalar_lea.vmem %s1242_s16, 512  ;;  %p1244_p4 = scmp.lt.s32.totalorder %s1511_s23, %s1242_s16 }
  0x57   : > { %p1239_p2 = pnand %p1237_p12, %p1223_p0  ;;  %p1245_p13 = scmp.lt.s32.totalorder %s1243_s19, %s1236_s12 }
  0x59   : > { %p1240_p7 = pneg %p1239_p2  ;;  %p1246_p6 = por %p1245_p13, %p1244_p4 }
  0x5b   : > { %p1247_p10 = pnand %p1246_p6, %p1240_p7 }
  0x5d   : > { %1250 = shalt.err (!%p1247_p10)
}
  0x5e   : > { %s1330_s15 = smov 128   ;;  %s1331_s14 = smov 8  }
  0x5f   : > { %1111 = dma.hbm_to_vmem [thread:$0]  (!%p1513_p11), %s1509_s11, 256, %s1511_s23, %s1517_s10, %s1330_s15, %s1330_s15, %s1331_s14  }
  0x60   : > { %281 = sbr.rel (%p1416_p8) target bundleno = 598 (0x256), region = 48  ;;  %s1548_s20 = sand.u32 (!%p1416_p8), 1, %s1313_s25  }
  0x61   : > { %s921_s21 = sshll.u32 (!%p1416_p8), %s1548_s20, 4  ;;  %s284_s12 = scalar_lea.sflag (!%p1416_p8), [#allocation3], %s1548_s20 }
  0x62   : > { %s1554_s22 = scalar_lea.vmem (!%p1416_p8), [#allocation2], %s921_s21  ;;  %p1673_p4 = scmp.ne.s32.totalorder (!%p1416_p8), %s1666_s30, 0 }
  0x67   : > { %1296 = dma.done.wait (%p1673_p4), %s284_s12, 256  }
  0x68   : > { %1298 = vsyncadd (%p1673_p4), %s284_s12, 4294967040  ;;  %p1674_p7 = scmp.eq.s32.totalorder %s1397_s28, 0 }
  0x6a   : > { %1300 = dma.done.wait (%p1674_p7), [#allocation6], 10240   ;;  %p1675_p8 = pmov %p1674_p7 }
  0x6b   : > { %v1332_v0 = vmov 0.0   ;;  %v349_v1 = vld [vmem:[#allocation5 + $0x8] sm:$0xff]  ;;  %v351_v3 = vld [vmem:[#allocation5 + $0x18] sm:$0xff]  ;;  %v348_v6 = vld [vmem:[#allocation5] sm:$0xff]  ;;  %vm380_vm0 = vcmask 523264   ;;  %s325_s15 = scalar_lea.vmem [#allocation8], %s921_s21 }
  0x6c   : > { %1302 = vsyncadd (%p1675_p8), [#allocation6], 4294957056  ;;  %451 = vmatprep.mubr.f32.mxu0 %v1332_v0  ;;  %528 = vmatprep.mubr.f32.mxu1 %v1332_v0  ;;  %v353_v2 = vld [vmem:[#allocation5 + $0x28] sm:$0xff]  ;;  %v355_v5 = vld [vmem:[#allocation5 + $0x38] sm:$0xff]  ;;  %s820_s14 = sshll.u32 %s325_s15, 4  ;;  %s939_s12 = sshll.u32 %s1397_s28, 8  ;;  %s1605_s14 = int_to_ptr.vmem [resolvable:$true] %s820_s14 }
  0x6d   : > { %v993_v4 = vpack.c.bf16 %v353_v2, %v349_v1  ;;  %v352_v7 = vld [vmem:[#allocation5 + $0x20] sm:$0xff]  ;;  %v1009_v8 = vpack.c.bf16 %v355_v5, %v351_v3  ;;  %v350_v10 = vld [vmem:[#allocation5 + $0x10] sm:$0xff]  ;;  %v357_v12 = vld [vmem:[#allocation5 + $0x48] sm:$0xff]  ;;  %s1610_s9 = scalar_lea.hbm %s1662_s7, %s939_s12  ;;  %s807_s21 = scalar_lea.sflag [#allocation4], %s1548_s20 }
  0x6e   : > { %v995_v9 = vpack.c.bf16 %v352_v7, %v348_v6  ;;  %v354_v11 = vld [vmem:[#allocation5 + $0x30] sm:$0xff]  ;;  %v361_v14 = vld [vmem:[#allocation5 + $0x68] sm:$0xff]  ;;  %v359_v15 = vld [vmem:[#allocation5 + $0x58] sm:$0xff]  ;;  %s1251_s11 = scalar_lea.vmem %s1605_s14, 256  ;;  %p1676_p0 = scmp.ne.s32.totalorder %s1671_s18, 0 }
  0x6f   : > { %994 = vmatprep.subr.bf16.mxu0 %v993_v4  ;;  %v1011_v13 = vpack.c.bf16 %v354_v11, %v350_v10  ;;  %v363_v16 = vld [vmem:[#allocation5 + $0x78] sm:$0xff]  ;;  %1010 = vmatprep.subr.bf16.mxu1 %v1009_v8  ;;  %v997_v17 = vpack.c.bf16 %v361_v14, %v357_v12  ;;  %v356_v19 = vld [vmem:[#allocation5 + $0x40] sm:$0xff]  ;;  %v358_v21 = vld [vmem:[#allocation5 + $0x50] sm:$0xff]  ;;  %p1252_p11 = scmp.ne.s32.totalorder %s1605_s14, %s1251_s11  ;;  %s1333_s28 = smov [#allocation8]  }
  0x70   : > { %996 = vmatpush1.bf16.msra.mxu0 %v995_v9  ;;  %v1013_v18 = vpack.c.bf16 %v363_v16, %v359_v15  ;;  %v360_v20 = vld [vmem:[#allocation5 + $0x60] sm:$0xff]  ;;  %v362_v23 = vld [vmem:[#allocation5 + $0x70] sm:$0xff]  ;;  %v365_v24 = vld [vmem:[#allocation5 + $0x88] sm:$0xff]  ;;  %s1255_s23 = sshll.u32 %s1333_s28, 4  ;;  %s1256_s23 = int_to_ptr.vmem [resolvable:$false] %s1255_s23 }
  0x71   : > { %1012 = vmatpush1.bf16.msra.mxu1 %v1011_v13  ;;  %v999_v22 = vpack.c.bf16 %v360_v20, %v356_v19  ;;  %v369_v25 = vld [vmem:[#allocation5 + $0xa8] sm:$0xff]  ;;  %998 = vmatprep.subr.bf16.mxu0 %v997_v17  ;;  %v1015_v26 = vpack.c.bf16 %v362_v23, %v358_v21  ;;  %v367_v28 = vld [vmem:[#allocation5 + $0x98] sm:$0xff]  ;;  %v364_v30 = vld [vmem:[#allocation5 + $0x80] sm:$0xff]  ;;  %p1253_p1 = pnand %p1252_p11, %p1676_p0  ;;  %s1257_s29 = scalar_lea.vmem %s1256_s23, 512 }
  0x72   : > { %1014 = vmatprep.subr.bf16.mxu1 %v1013_v18  ;;  %v1001_v27 = vpack.c.bf16 %v369_v25, %v365_v24  ;;  %v371_v29 = vld [vmem:[#allocation5 + $0xb8] sm:$0xff]  ;;  %v368_v32 = vld [vmem:[#allocation5 + $0xa0] sm:$0xff]  ;;  %v366_v33 = vld [vmem:[#allocation5 + $0x90] sm:$0xff]  ;;  %p1258_p5 = scmp.lt.s32.totalorder %s1605_s14, %s1256_s23  ;;  %p1259_p9 = scmp.lt.s32.totalorder %s1257_s29, %s1251_s11 }
  0x73   : > { %v1017_v31 = vpack.c.bf16 %v371_v29, %v367_v28  ;;  %v370_v34 = vld [vmem:[#allocation5 + $0xb0] sm:$0xff]  ;;  %v1003_v35 = vpack.c.bf16 %v368_v32, %v364_v30  ;;  %v373_v36 = vld [vmem:[#allocation5 + $0xc8] sm:$0xff]  ;;  %v375_v38 = vld [vmem:[#allocation5 + $0xd8] sm:$0xff]  ;;  %p1254_p3 = pneg %p1253_p1 }
  0x74   : > { %1000 = vmatpush1.bf16.msra.mxu0 %v999_v22  ;;  %v377_v37 = vld [vmem:[#allocation5 + $0xe8] sm:$0xff]  ;;  %v1019_v39 = vpack.c.bf16 %v370_v34, %v366_v33  ;;  %v379_v41 = vld [vmem:[#allocation5 + $0xf8] sm:$0xff]  ;;  %v372_v42 = vld [vmem:[#allocation5 + $0xc0] sm:$0xff]  ;;  %p1260_p12 = por %p1259_p9, %p1258_p5 }
  0x75   : > { %1016 = vmatpush1.bf16.msra.mxu1 %v1015_v26  ;;  %1002 = vmatprep.subr.bf16.mxu0 %v1001_v27  ;;  %v1005_v40 = vpack.c.bf16 %v377_v37, %v373_v36  ;;  %v376_v43 = vld [vmem:[#allocation5 + $0xe0] sm:$0xff]  ;;  %v1021_v44 = vpack.c.bf16 %v379_v41, %v375_v38  ;;  %v374_v45 = vld [vmem:[#allocation5 + $0xd0] sm:$0xff]  ;;  %v327_v50 = vld [vmem:[%s1554_s22 + $0x8] sm:$0xff] }
  0x76   : > { %1018 = vmatprep.subr.bf16.mxu1 %v1017_v31  ;;  %v378_v46 = vld [vmem:[#allocation5 + $0xf0] sm:$0xff]  ;;  %v925_v48 = vld [vmem:[%s1658_s3] ss:$0 sm:$0xff]  ;;  %v1007_v51 = vpack.c.bf16 %v376_v43, %v372_v42  ;;  %v587_v54 = vld [vmem:[#allocation7 + $0x8] sm:$0xff]  ;;  %p1261_p2 = pnand %p1260_p12, %p1254_p3 }
  0x77   : > { %v326_v47 = vld [vmem:[%s1554_s22] sm:$0xff]  ;;  %v336_v53 = vmul.f32 %v925_v48, %v327_v50  ;;  %v1023_v56 = vpack.c.bf16 %v378_v46, %v374_v45  ;;  %v591_v59 = vld [vmem:[#allocation7 + $0x28] sm:$0xff]  ;;  %v589_v62 = vld [vmem:[#allocation7 + $0x18] sm:$0xff] }
  0x78   : > { %v926_v49 = vld [vmem:[%s1659_s4] ss:$0 sm:$0xff]  ;;  %1004 = vmatpush1.bf16.msra.mxu0 %v1003_v35  ;;  %v335_v52 = vmul.f32 %v925_v48, %v326_v47  ;;  %v588_v58 = vld [vmem:[#allocation7 + $0x10] sm:$0xff]  ;;  %v593_v2 = vld [vmem:[#allocation7 + $0x38] sm:$0xff] }
  0x79   : > { %v590_v55 = vld [vmem:[#allocation7 + $0x20] sm:$0xff]  ;;  %1020 = vmatpush1.bf16.msra.mxu1 %v1019_v39  ;;  %1006 = vmatprep.subr.bf16.mxu0 %v1005_v40  ;;  %v1057_v63 = vpack.c.bf16 %v591_v59, %v588_v58  ;;  %v345_v1 = vadd.f32 %v926_v49, %v336_v53  ;;  %v596_v3 = vld [vmem:[#allocation7 + $0x50] sm:$0xff]  ;;  %v597_v6 = vld [vmem:[#allocation7 + $0x58] sm:$0xff] }
  0x7a   : > { %v1025_v57 = vpack.c.bf16 %v590_v55, %v587_v54  ;;  %1022 = vmatprep.subr.bf16.mxu1 %v1021_v44  ;;  %v344_v60 = vadd.f32 %v926_v49, %v335_v52  ;;  %v586_v61 = vld [vmem:[#allocation7] sm:$0xff]  ;;  %v1029_v8 = vpack.c.bf16 %v596_v3, %v593_v2  ;;  %v592_v9 = vld [vmem:[#allocation7 + $0x30] sm:$0xff]  ;;  %v595_v10 = vld [vmem:[#allocation7 + $0x48] sm:$0xff] }
  0x7b   : > { %v594_v5 = vld [vmem:[#allocation7 + $0x40] sm:$0xff]  ;;  %v1027_v7 = vpack.c.bf16 %v589_v62, %v586_v61  ;;  %v347_v11 = vmax.f32 %v345_v1, 0.0  ;;  %v599_v13 = vld [vmem:[#allocation7 + $0x68] sm:$0xff]  ;;  %v600_v15 = vld [vmem:[#allocation7 + $0x70] sm:$0xff]  ;;  %v1031_v17 = vpack.c.bf16 %v595_v10, %v592_v9 }
  0x7c   : > { %1008 = vmatpush1.bf16.msra.mxu0 %v1007_v51  ;;  %v346_v4 = vmax.f32 %v344_v60, 0.0  ;;  %v1061_v12 = vpack.c.bf16 %v597_v6, %v594_v5  ;;  %v602_v14 = vld [vmem:[#allocation7 + $0x80] sm:$0xff]  ;;  %v603_v16 = vld [vmem:[#allocation7 + $0x88] sm:$0xff]  ;;  %v601_v20 = vld [vmem:[#allocation7 + $0x78] sm:$0xff]  ;;  %v541_v5 = vlaneseq }
  0x7d   : > { %1024 = vmatpush1.bf16.msra.mxu1 %v1023_v56  ;;  %1026 = vmatprep.subr.bf16.mxu0 %v1025_v57  ;;  %v1033_v18 = vpack.c.bf16 %v602_v14, %v599_v13  ;;  %v598_v19 = vld [vmem:[#allocation7 + $0x60] sm:$0xff]  ;;  %v1065_v21 = vpack.c.bf16 %v603_v16, %v600_v15  ;;  %v605_v22 = vld [vmem:[#allocation7 + $0x98] sm:$0xff]  ;;  %v608_v23 = vld [vmem:[#allocation7 + $0xb0] sm:$0xff] }
  0x7e   : > { %1058 = vmatprep.subr.bf16.mxu1 %v1057_v63  ;;  %v1035_v24 = vpack.c.bf16 %v601_v20, %v598_v19  ;;  %v1037_v25 = vpack.c.bf16 %v608_v23, %v605_v22  ;;  %v604_v26 = vld [vmem:[#allocation7 + $0x90] sm:$0xff]  ;;  %v607_v27 = vld [vmem:[#allocation7 + $0xa8] sm:$0xff]  ;;  %v606_v28 = vld [vmem:[#allocation7 + $0xa0] sm:$0xff]  ;;  %v542_v6 = vshrl.u32 %v541_v5, 7 }
  0x7f   : > { %927 = vmatmul.mubr.msk.f32.vlgmr.msra.gmra.mrb[0].mxu0 %vm380_vm0, %v346_v4  ;;  %v1039_v29 = vpack.c.bf16 %v607_v27, %v604_v26  ;;  %v609_v30 = vld [vmem:[#allocation7 + $0xb8] sm:$0xff]  ;;  %v611_v32 = vld [vmem:[#allocation7 + $0xc8] sm:$0xff]  ;;  %v614_v33 = vld [vmem:[#allocation7 + $0xe0] sm:$0xff] }
  0x80   : > { %929 = vmatmul.mubr.msk.f32.vlgmr.msra.gmra.mrb[0].mxu1 %vm380_vm0, %v346_v4  ;;  %457 = vmatprep.mubr.f32.mxu0 %v1332_v0  ;;  %v1069_v31 = vpack.c.bf16 %v609_v30, %v606_v28  ;;  %v1041_v34 = vpack.c.bf16 %v614_v33, %v611_v32  ;;  %v610_v35 = vld [vmem:[#allocation7 + $0xc0] sm:$0xff]  ;;  %v613_v36 = vld [vmem:[#allocation7 + $0xd8] sm:$0xff]  ;;  %v612_v37 = vld [vmem:[#allocation7 + $0xd0] sm:$0xff]  ;;  %vm548_vm1 = vcmp.lt.s32.totalorder %v542_v6, 1  ;;  %vm544_vm2 = vcmp.gt.s32.totalorder %v542_v6, 0 }
  0x81   : > { %534 = vmatprep.mubr.f32.mxu1 %v1332_v0  ;;  %1028 = vmatpush1.bf16.msra.mxu0 %v1027_v7  ;;  %v1043_v38 = vpack.c.bf16 %v613_v36, %v610_v35  ;;  %v615_v39 = vld [vmem:[#allocation7 + $0xe8] sm:$0xff]  ;;  %v617_v41 = vld [vmem:[#allocation7 + $0xf8] sm:$0xff]  ;;  %v620_v42 = vld [vmem:[#allocation7 + $0x110] sm:$0xff]  ;;  %vm557_vm3 = vcmp.lt.s32.totalorder %v542_v6, 7 }
  0x82   : > { %1060 = vmatpush3.bf16.msra.mxu1 %v1057_v63  ;;  %1030 = vmatprep.subr.bf16.mxu0 %v1029_v8  ;;  %v1073_v40 = vpack.c.bf16 %v615_v39, %v612_v37  ;;  %v1045_v43 = vpack.c.bf16 %v620_v42, %v617_v41  ;;  %v616_v44 = vld [vmem:[#allocation7 + $0xf0] sm:$0xff]  ;;  %v619_v45 = vld [vmem:[#allocation7 + $0x108] sm:$0xff]  ;;  %v618_v46 = vld [vmem:[#allocation7 + $0x100] sm:$0xff] }
  0x83   : > { %928 = vmatmul.mubr.msk.f32.gmra.mrb[2].mxu0 %vm380_vm0, %v347_v11  ;;  %1062 = vmatprep.subr.bf16.mxu1 %v1061_v12  ;;  %v1047_v47 = vpack.c.bf16 %v619_v45, %v616_v44  ;;  %v621_v48 = vld [vmem:[#allocation7 + $0x118] sm:$0xff]  ;;  %v623_v50 = vld [vmem:[#allocation7 + $0x128] sm:$0xff]  ;;  %v626_v51 = vld [vmem:[#allocation7 + $0x140] sm:$0xff] }
  0x84   : > { %930 = vmatmul.mubr.msk.f32.gmra.mrb[2].mxu1 %vm380_vm0, %v347_v11  ;;  %698 = vmatprep.mubr.f32.mxu0 %v1332_v0  ;;  %v1077_v49 = vpack.c.bf16 %v621_v48, %v618_v46  ;;  %v1049_v52 = vpack.c.bf16 %v626_v51, %v623_v50  ;;  %v622_v53 = vld [vmem:[#allocation7 + $0x120] sm:$0xff]  ;;  %v625_v54 = vld [vmem:[#allocation7 + $0x138] sm:$0xff]  ;;  %v624_v55 = vld [vmem:[#allocation7 + $0x130] sm:$0xff]  ;;  %v543_v11 = vadd.s32 8, %v542_v6 }
  0x85   : > { %1032 = vmatpush1.bf16.msra.mxu0 %v1031_v17  ;;  %v1051_v56 = vpack.c.bf16 %v625_v54, %v622_v53  ;;  %v627_v57 = vld [vmem:[#allocation7 + $0x148] sm:$0xff]  ;;  %v629_v59 = vld [vmem:[#allocation7 + $0x158] sm:$0xff]  ;;  %v632_v60 = vld [vmem:[#allocation7 + $0x170] sm:$0xff] }
  0x86   : > { %1064 = vmatpush3.bf16.msra.mxu1 %v1061_v12  ;;  %1034 = vmatprep.subr.bf16.mxu0 %v1033_v18  ;;  %v1081_v58 = vpack.c.bf16 %v627_v57, %v624_v55  ;;  %v1053_v61 = vpack.c.bf16 %v632_v60, %v629_v59  ;;  %v628_v62 = vld [vmem:[#allocation7 + $0x150] sm:$0xff]  ;;  %v631_v63 = vld [vmem:[#allocation7 + $0x168] sm:$0xff]  ;;  %v630_v1 = vld [vmem:[#allocation7 + $0x160] sm:$0xff]  ;;  %vm554_vm4 = vcmp.lt.s32.totalorder %v543_v11, 15 }
  0x87   : > { %1066 = vmatprep.subr.bf16.mxu1 %v1065_v21  ;;  %v1055_v2 = vpack.c.bf16 %v631_v63, %v628_v62  ;;  %v633_v3 = vld [vmem:[#allocation7 + $0x178] sm:$0xff]  ;;  %v931_v28 = vld [vmem:[%s1660_s5] ss:$0 sm:$0xff] }
  0x88   : > { %v1085_v4 = vpack.c.bf16 %v633_v3, %v630_v1 }
  0x89   : > { %1036 = vmatpush1.bf16.msra.mxu0 %v1035_v24 }
  0x8a   : > { %1068 = vmatpush3.bf16.msra.mxu1 %v1065_v21  ;;  %1038 = vmatprep.subr.bf16.mxu0 %v1037_v25 }
  0x8b   : > { %1070 = vmatprep.subr.bf16.mxu1 %v1069_v31 }
  0x8d   : > { %1040 = vmatpush1.bf16.msra.mxu0 %v1039_v29 }
  0x8e   : > { %1072 = vmatpush3.bf16.msra.mxu1 %v1069_v31  ;;  %1042 = vmatprep.subr.bf16.mxu0 %v1041_v34  ;;  %v932_v31 = vld [vmem:[%s1661_s6] ss:$0 sm:$0xff] }
  0x8f   : > { %1074 = vmatprep.subr.bf16.mxu1 %v1073_v40 }
  0x91   : > { %1044 = vmatpush1.bf16.msra.mxu0 %v1043_v38 }
  0x92   : > { %1076 = vmatpush3.bf16.msra.mxu1 %v1073_v40  ;;  %1046 = vmatprep.subr.bf16.mxu0 %v1045_v43 }
  0x93   : > { %1078 = vmatprep.subr.bf16.mxu1 %v1077_v49 }
  0x95   : > { %1048 = vmatpush1.bf16.msra.mxu0 %v1047_v47 }
  0x96   : > { %1080 = vmatpush3.bf16.msra.mxu1 %v1077_v49  ;;  %1050 = vmatprep.subr.bf16.mxu0 %v1049_v52 }
  0x97   : > { %1082 = vmatprep.subr.bf16.mxu1 %v1081_v58 }
  0x99   : > { %1052 = vmatpush1.bf16.msra.mxu0 %v1051_v56 }
  0x9a   : > { %1084 = vmatpush3.bf16.msra.mxu1 %v1081_v58  ;;  %1054 = vmatprep.subr.bf16.mxu0 %v1053_v61 }
  0x9b   : > { %1086 = vmatprep.subr.bf16.mxu1 %v1085_v4 }
  0x9d   : > { %1056 = vmatpush1.bf16.msra.mxu0 %v1055_v2 }
  0x9e   : > { %1088 = vmatpush3.bf16.msra.mxu1 %v1085_v4 }
 0x152   : > { %v453_v7 = vpop.f32.mrb[0].mxu0 }
 0x153   : > { %v455_v8 = vpop.f32.mrb[1].mxu0  ;;  %v530_v9 = vpop.f32.mrb[0].mxu1  ;;  %v546_v14 = vrot.slane %v453_v7, 7 }
 0x154   : > { %v1581_v10 = vpop.f32.mrb[1].mxu1  ;;  %v555_v12 = vrot.slane %v530_v9, 1 }
 0x156   : > { %v459_v13 = vpop.f32.mrb[2].mxu0 }
 0x157   : > { %v547_v15 = vrot.slane %v459_v13, 7  ;;  %v536_v16 = vpop.f32.mrb[2].mxu1  ;;  %v461_v17 = vpop.f32.mrb[3].mxu0 }
 0x158   : > { %v556_v18 = vrot.slane %v536_v16, 1  ;;  %v538_v19 = vpop.f32.mrb[3].mxu1 }
 0x159   : > { %v550_v20 = vsel %vm548_vm1, %v547_v15, %v546_v14  ;;  %v549_v21 = vsel %vm548_vm1, %v546_v14, %v547_v15 }
 0x15a   : > { %v551_v22 = vsel %vm544_vm2, %v550_v20, 0.0  ;;  %v558_v23 = vsel %vm557_vm3, %v555_v12, %v556_v18  ;;  %v559_v24 = vsel %vm557_vm3, %v556_v18, %v555_v12  ;;  %v563_v25 = vadd.f32 %v549_v21, %v461_v17 }
 0x15b   : > { %v562_v26 = vadd.f32 %v551_v22, %v455_v8  ;;  %v561_v27 = vsel %vm554_vm4, %v559_v24, 0.0 }
 0x15c   : > { %v565_v29 = vadd.f32 %v563_v25, %v561_v27 }
 0x15d   : > { %v564_v30 = vadd.f32 %v562_v26, %v558_v23 }
 0x15e   : > { %v574_v32 = vmul.f32 %v931_v28, %v565_v29 }
 0x15f   : > { %v573_v33 = vmul.f32 %v931_v28, %v564_v30 }
 0x160   : > { %v583_v34 = vadd.f32 %v932_v31, %v574_v32 }
 0x161   : > { %v582_v35 = vadd.f32 %v932_v31, %v573_v33 }
 0x162   : > { %v585_v37 = vmax.f32 %v583_v34, 0.0 }
 0x163   : > { %v584_v36 = vmax.f32 %v582_v35, 0.0 }
 0x165   : > { %699 = vmatmul.mubr.f32.vlgmr.msra.gmra.mrb[4].mxu0 %v584_v36  ;;  %990 = vmatprep.mubr.f32.mxu1 %v584_v36 }
 0x166   : > { %991 = vmatmul.mubr.f32.vlgmr.msra.gmra.mrb[4].mxu1 %v585_v37  ;;  %704 = vmatprep.mubr.f32.mxu0 %v1332_v0 }
 0x169   : > { %705 = vmatmul.mubr.f32.gmra.mrb[6].mxu0 %v585_v37 }
 0x238   : > { %v700_v38 = vpop.f32.mrb[4].mxu0 }
 0x239   : > { %v702_v39 = vpop.f32.mrb[5].mxu0  ;;  %v992_v40 = vpop.f32.mrb[4].mxu1  ;;  %v786_v45 = vrot.slane %v700_v38, 7 }
 0x23a   : > { %v793_v41 = vrot.slane %v992_v40, 1  ;;  %v777_v42 = vpop.f32.mrb[5].mxu1 }
 0x23b   : > { %v792_v43 = vrot.slane %v777_v42, 1 }
 0x23c   : > { %v706_v44 = vpop.f32.mrb[6].mxu0 }
 0x23d   : > { %v794_v46 = vsel %vm557_vm3, %v792_v43, %v793_v41  ;;  %v795_v47 = vsel %vm557_vm3, %v793_v41, %v792_v43  ;;  %v787_v48 = vrot.slane %v706_v44, 7  ;;  %v708_v49 = vpop.f32.mrb[7].mxu0 }
 0x23e   : > { %v797_v54 = vsel %vm554_vm4, %v795_v47, 0.0 }
 0x23f   : > { %v789_v50 = vsel %vm548_vm1, %v787_v48, %v786_v45  ;;  %v788_v0 = vsel %vm548_vm1, %v786_v45, %v787_v48 }
 0x240   : > { %v790_v51 = vsel %vm544_vm2, %v789_v50, 0.0  ;;  %v799_v52 = vadd.f32 %v788_v0, %v708_v49 }
 0x241   : > { %v798_v53 = vadd.f32 %v790_v51, %v702_v39 }
 0x242   : > { %v801_v55 = vadd.f32 %v799_v52, %v797_v54 }
 0x243   : > { %v800_v56 = vadd.f32 %v798_v53, %v794_v46 }
 0x244   : > { %v803_v57 = vadd.f32 %v801_v55, %v538_v19 }
 0x245   : > { %v802_v58 = vadd.f32 %v800_v56, %v1581_v10 }
 0x246   : > { %805 = vst [vmem:[%s325_s15 + $0x8] sm:$0xff] %v803_v57 }
 0x247   : > { %804 = vst [vmem:[%s325_s15] sm:$0xff] %v802_v58 }
 0x248   : > { %1264 = shalt.err (!%p1261_p2)
}
 0x249   : > { %s1265_s10 = scalar_lea.hbm %s1610_s9, 256  ;;  %s1269_s15 = scalar_lea.hbm %s1662_s7, 512 }
 0x24a   : > { %p1266_p13 = scmp.ne.s32.totalorder %s1610_s9, %s1265_s10  ;;  %p1270_p4 = scmp.lt.u32.totalorder %s1610_s9, %s1662_s7 }
 0x24b   : > { %p1271_p7 = scmp.lt.u32.totalorder %s1269_s15, %s1265_s10  ;;  %p1273_p11 = scmp.lt.u32.totalorder %s1265_s10, %s1610_s9 }
 0x24c   : > { %p1267_p6 = pnand %p1266_p13, %p1676_p0 }
 0x24d   : > { %p1272_p8 = por %p1271_p7, %p1270_p4 }
 0x24e   : > { %p1268_p10 = pneg %p1267_p6 }
 0x24f   : > { %p1274_p1 = por %p1273_p11, %p1272_p8 }
 0x251   : > { %p1275_p3 = pnand %p1274_p1, %p1268_p10 }
 0x253   : > { %1278 = shalt.err (!%p1275_p3)
}
 0x254   : > { %s1334_s30 = smov 128   ;;  %s1335_s11 = smov 8  }
 0x255   : > { %1099 = dma.vmem_to_hbm [thread:$0]  (%p1676_p0), %s1605_s14, 256, %s1610_s9, %s807_s21, %s1334_s30, %s1334_s30, %s1335_s11  }
 0x256 PF: > { %s835_s28 = sand.u32 1, %s1309_s24   ;;  %p1677_p5 = scmp.ne.s32.totalorder %s1667_s8, 0 }
 0x257   : > { %p1678_p9 = scmp.ge.s32.totalorder %s1321_s27, 2  ;;  %s836_s23 = scalar_lea.sflag [#allocation4], %s835_s28 }
 0x259   : > { %p1113_p12 = pnand %p1678_p9, %p1677_p5 }
 0x25b   : > { %1304 = dma.done.wait (!%p1113_p12), %s836_s23, 256  }
 0x25c   : > { %1306 = vsyncadd (!%p1113_p12), %s836_s23, 4294967040  ;;  %p21_p2 = scmp.ge.s32.totalorder %s1486_s13, 4   ;;  %s1679_s24 = smov %s1313_s25 }
 0x25d   : > { %s1680_s25 = smov %s1317_s26  ;;  %s1681_s26 = smov %s1495_s17 }
 0x25e   : > { %s1682_s27 = smov %s1486_s13  ;;  %23 = sbr.rel (!%p21_p2) target bundleno = 6 (0x6), region = 101 }
 0x265   :  { %841 = vsyncpa [#allocation3], 1 }
 0x266   :  { %843 = vsyncpa [#allocation3 + $0x1], 1 }
 0x267   :  { %844 = vsyncpa [#allocation6], 1 }
 0x268   :  { %845 = vsyncpa [#allocation4], 1 }
 0x269   :  { %847 = vsyncpa [#allocation4 + $0x1], 1 }

</bundles_post_ra>
